<compile_context>
chip_gen: v7x
topology: tpu7x:2x2x1
jax: 0.10.0
libtpu: 0.0.40
codegen_flags: <defaults>
</compile_context>

<pallas_src>
import functools
import math

import jax
import jax.numpy as jnp
from jax.experimental import pallas as pl
from jax.experimental.pallas import tpu as pltpu

LANE = 128
DEFAULT_BLOCK_BYTES = 8 * 1024 * 1024     # per x/out block target (v7x-friendly)
VMEM_BUDGET_BYTES = 40 * 1024 * 1024      # total: 2x(x) + 2x(out) + 2x(pe) buffers
VMEM_LIMIT_BYTES = 48 * 1024 * 1024       # requested only when footprint > 24 MiB


def make_sin_table(embedding_dim: int, max_len: int = 5000) -> jnp.ndarray:
    """Sinusoidal table identical to PositionalEncoding.__init__ (f32 buffer)."""
    pos = jnp.arange(max_len, dtype=jnp.float32)[:, None]                    # (max_len, 1)
    div = jnp.exp(jnp.arange(0, embedding_dim, 2, dtype=jnp.float32)
                  * (-math.log(10000.0) / embedding_dim))                    # (E/2,)
    table = jnp.zeros((max_len, embedding_dim), dtype=jnp.float32)
    table = table.at[:, 0::2].set(jnp.sin(pos * div))
    table = table.at[:, 1::2].set(jnp.cos(pos * div))
    return table


def _round_up(a: int, b: int) -> int:
    return ((a + b - 1) // b) * b


def _largest_aligned_divisor(e: int, limit: int) -> int:
    """Largest divisor of `e` that is a multiple of 128 and <= limit (needs e % 128 == 0)."""
    m = e // LANE
    best = 1
    for d in range(1, m + 1):
        if m % d == 0 and d * LANE <= limit:
            best = d
    return best * LANE


def _add_pe_kernel(x_ref, pe_ref, o_ref, *, reps: int):
    """o = x + tile(pe, reps) along the flattened batch*embed lane axis."""
    pe = pe_ref[...].astype(o_ref.dtype)
    if reps > 1:
        pe = jnp.tile(pe, (1, reps))          # in-register replication; hides under DMA
    o_ref[...] = x_ref[...].astype(o_ref.dtype) + pe


def _choose_rows(s, pack, per_row_block, per_row_foot, block_bytes, want_steps):
    """Largest row tile (multiple of `pack`) meeting the block + VMEM budgets.
    When `want_steps`, cap so the S grid axis gets >=2 (preferably >=4) steps."""
    rows = max(pack, (block_bytes // max(per_row_block, 1) // pack) * pack)
    rows = min(rows, max(pack, (VMEM_BUDGET_BYTES // max(per_row_foot, 1) // pack) * pack))
    if want_steps:
        for steps in (4, 2):
            if s >= steps * pack:
                rows = min(rows, max(pack, ((s // steps) // pack) * pack))
                break
    return s if rows >= s else rows


def _compiler_params(n_axes: int, footprint_bytes: int) -> pltpu.CompilerParams:
    vmem_limit = VMEM_LIMIT_BYTES if footprint_bytes > 24 * 1024 * 1024 else None
    return pltpu.CompilerParams(dimension_semantics=("parallel",) * n_axes,
                                vmem_limit_bytes=vmem_limit)


def positional_encoding(x: jnp.ndarray, pe_table: jnp.ndarray,
                        *, block_bytes: int = DEFAULT_BLOCK_BYTES) -> jnp.ndarray:
    """x: (S, B, E); pe_table: (max_len, E). Returns x + pe_table[:S][:, None, :]."""
    S, B, E = x.shape
    out_dtype = jnp.promote_types(x.dtype, pe_table.dtype)   # match torch type promotion
    pe = pe_table[:S]                                         # (S, E), kept in its own dtype

    isz_x = jnp.dtype(x.dtype).itemsize
    isz_o = jnp.dtype(out_dtype).itemsize
    isz_pe = jnp.dtype(pe.dtype).itemsize
    isz_blk = max(isz_x, isz_o)
    pack = max(8, 32 // min(isz_x, isz_o))    # sublane pack: 8 f32 / 16 bf16 / 32 int8

    W = B * E
    x2 = x.reshape(S, W)                      # free row-major reshape

    if E % LANE == 0:
        # ---------- lane-aligned path: 2-D grid (S tiles, lane tiles), fully dense ----------
        if pack * W * isz_blk <= block_bytes:
            # Even a minimum-row block of the full row fits: no lane split needed.
            tw, reps, pe_w = W, B, E
            pe_map = lambda i, j: (i, 0)
        else:
            lane_target = max(LANE, block_bytes // (pack * isz_blk))
            if E <= lane_target:
                # Lane tile = whole batch segments; pe replicated `reps` times in-kernel.
                reps = min(B, max(1, lane_target // E))
                tw, pe_w = reps * E, E
                pe_map = lambda i, j: (i, 0)
            else:
                # Split *within* E: tw | E, so the pe block is picked purely by the
                # index_map and the kernel is a plain dense add.
                tw = _largest_aligned_divisor(E, lane_target)
                reps, pe_w = 1, tw
                r = E // tw
                pe_map = lambda i, j: (i, j % r)
        n_lane = pl.cdiv(W, tw)
        per_row_block = tw * isz_blk
        per_row_foot = 2 * tw * (isz_x + isz_o) + 2 * _round_up(pe_w, LANE) * isz_pe
        ts = _choose_rows(S, pack, per_row_block, per_row_foot, block_bytes,
                          want_steps=(n_lane == 1))
        footprint = max(pack, _round_up(ts, pack)) * per_row_foot

        out = pl.pallas_call(
            functools.partial(_add_pe_kernel, reps=reps),
            out_shape=jax.ShapeDtypeStruct((S, W), out_dtype),
            grid=(pl.cdiv(S, ts), n_lane),
            in_specs=[pl.BlockSpec((ts, tw), lambda i, j: (i, j)),
                      pl.BlockSpec((ts, pe_w), pe_map)],
            out_specs=pl.BlockSpec((ts, tw), lambda i, j: (i, j)),
            compiler_params=_compiler_params(2, footprint),
        )(x2, pe)
        return out.reshape(S, B, E)

    # ---------- E not a multiple of 128 (small/odd embed dims): full-width flat blocks ----
    # When B*E % 128 != 0 the tail vreg store is masked; that only matters for trivially
    # small rows, and padding x in the wrapper would cost two extra HBM passes over x.
    # TODO(synk): lane-split + dense-store variant for huge B*E with odd E (pathological
    # for a transformer embedding dim, so not implemented here).
    w_v = _round_up(W, LANE)
    per_row_block = w_v * isz_blk
    per_row_foot = 2 * w_v * (isz_x + isz_o) + 2 * _round_up(E, LANE) * isz_pe
    ts = _choose_rows(S, pack, per_row_block, per_row_foot, block_bytes, want_steps=True)
    footprint = max(pack, _round_up(ts, pack)) * per_row_foot

    out = pl.pallas_call(
        functools.partial(_add_pe_kernel, reps=B),
        out_shape=jax.ShapeDtypeStruct((S, W), out_dtype),
        grid=(pl.cdiv(S, ts),),
        in_specs=[pl.BlockSpec((ts, W), lambda i: (i, 0)),
                  pl.BlockSpec((ts, E), lambda i: (i, 0))],
        out_specs=pl.BlockSpec((ts, W), lambda i: (i, 0)),
        compiler_params=_compiler_params(1, footprint),
    )(x2, pe)
    return out.reshape(S, B, E)


if __name__ == "__main__":
    MAX_LEN = 2048   # module default is 5000; a smaller synthetic table is plenty here

    def check(S, B, E, key, block_bytes=DEFAULT_BLOCK_BYTES):
        x = jax.random.normal(key, (S, B, E), dtype=jnp.float32)
        pe_table = make_sin_table(E, MAX_LEN)
        out = positional_encoding(x, pe_table, block_bytes=block_bytes)
        jax.block_until_ready(out)
        ref = x + pe_table[:S][:, None, :]                 # pure-JAX reference
        assert out.shape == x.shape and out.dtype == ref.dtype
        assert jnp.allclose(out, ref, atol=1e-6), f"mismatch at S={S} B={B} E={E}"

    keys = jax.random.split(jax.random.PRNGKey(0), 4)
    # Primary module-like small shape (seq-first): odd E -> full-width flat path.
    check(S=8, B=2, E=32, key=keys[0])
    # Lane-aligned path, multi-step S grid (>=4 steps), pe replicated over B in-kernel.
    check(S=64, B=4, E=128, key=keys[1])
    # Lane-aligned path with a lane-axis grid split into whole batch segments.
    check(S=64, B=4, E=128, key=keys[2], block_bytes=8 * 1024)
    # Lane-aligned path split *within* E (pe block chosen by index_map j % r).
    check(S=32, B=2, E=512, key=keys[3], block_bytes=8 * 1024)

    print("KERNEL_OK")
</pallas_src>

<mosaic_0001>
module attributes {stable_mosaic.version = 11 : i64} {
  func.func @_add_pe_kernel(%arg0: i32, %arg1: memref<8x64xf32, #tpu.memory_space<vmem>>, %arg2: memref<8x32xf32, #tpu.memory_space<vmem>>, %arg3: memref<8x64xf32, #tpu.memory_space<vmem>>) attributes {dimension_semantics = [#tpu.dimension_semantics<parallel>], iteration_bounds = array<i64: 1>, scalar_prefetch = 0 : i64, scratch_operands = 0 : i64, tpu.core_type = #tpu.core_type<tc>, window_params = [{transform_indices = @transform_0, window_bounds = array<i64: 8, 64>}, {transform_indices = @transform_1, window_bounds = array<i64: 8, 32>}, {transform_indices = @transform_2, window_bounds = array<i64: 8, 64>}]} {
    %c0 = arith.constant 0 : index
    %c0_0 = arith.constant 0 : index
    %0 = vector.load %arg2[%c0, %c0_0] : memref<8x32xf32, #tpu.memory_space<vmem>>, vector<8x32xf32>
    %1 = tpu.concatenate %0, %0 in 1 : vector<8x32xf32>, vector<8x32xf32> -> vector<8x64xf32>
    %c0_1 = arith.constant 0 : index
    %c0_2 = arith.constant 0 : index
    %2 = vector.load %arg1[%c0_1, %c0_2] : memref<8x64xf32, #tpu.memory_space<vmem>>, vector<8x64xf32>
    %3 = arith.addf %2, %1 : vector<8x64xf32>
    %c0_3 = arith.constant 0 : index
    %c0_4 = arith.constant 0 : index
    %4 = vector.load %arg3[%c0_3, %c0_4] : memref<8x64xf32, #tpu.memory_space<vmem>>, vector<8x64xf32>
    tpu.vector_store %arg3[%c0_3, %c0_4], %3 {strides = array<i32>} : memref<8x64xf32, #tpu.memory_space<vmem>>, vector<8x64xf32>,
    return
  }
  func.func @transform_0(%arg0: i32) -> (i32, i32) {
    %c0_i32 = arith.constant 0 : i32
    %c0_i32_0 = arith.constant 0 : i32
    return %arg0, %c0_i32 : i32, i32
  }
  func.func @transform_1(%arg0: i32) -> (i32, i32) {
    %c0_i32 = arith.constant 0 : i32
    %c0_i32_0 = arith.constant 0 : i32
    return %arg0, %c0_i32 : i32, i32
  }
  func.func @transform_2(%arg0: i32) -> (i32, i32) {
    %c0_i32 = arith.constant 0 : i32
    %c0_i32_0 = arith.constant 0 : i32
    return %arg0, %c0_i32 : i32, i32
  }
}

</mosaic_0001>

<bundles_post_ra>
// kernel: tpu_custom_call.1
= control target key start
LH: loop header
LB: loop body
LE: loop exit
PB: predicated region body
PF: predicated region fallthrough
CT: control target
= control target key end

     0   :  { %7 = vsyncpa [#allocation3], 0  ;;  %s194_s0 = inlined_call_operand.hbm [shape: f32[8,64], index: 0, kind: input, shape index: {}]   ;;  %s195_s1 = inlined_call_operand.hbm [shape: f32[8,32], index: 1, kind: input, shape index: {}]   ;;  %s196_s2 = inlined_call_operand.hbm [shape: f32[8,64], index: 2, kind: output, shape index: {}]  }
   0x1   :  { %8 = vsyncpa [#allocation6], 0 }
   0x2   :  { %9 = vsyncpa [#allocation4], 0  ;;  %s139_s9 = smov [#allocation2]   ;;  %s140_s11 = smov [#allocation5]  }
   0x3   :  { %s16_s10 = sshll.u32 %s139_s9, 4  ;;  %s26_s12 = sshll.u32 %s140_s11, 4  ;;  %s17_s10 = int_to_ptr.vmem [resolvable:$true] %s16_s10  ;;  %s27_s12 = int_to_ptr.vmem [resolvable:$true] %s26_s12 }
   0x4   :  { %s67_s15 = scalar_lea.hbm %s194_s0, 128 }
   0x5   :  { %p68_p0 = scmp.ne.s32.totalorder %s194_s0, %s67_s15  ;;  %p71_p1 = scmp.lt.u32.totalorder %s67_s15, %s194_s0 }
   0x7   :  { %p73_p2 = pnand %p71_p1, %p68_p0 }
   0x9   :  { %76 = shalt.err (!%p73_p2)
}
   0xa   :  { %s77_s20 = scalar_lea.vmem %s17_s10, 128  ;;  %p82_p4 = scmp.lt.s32.totalorder %s17_s10, %s17_s10 }
   0xb   :  { %p78_p3 = scmp.ne.s32.totalorder %s17_s10, %s77_s20  ;;  %p83_p5 = scmp.lt.s32.totalorder %s77_s20, %s77_s20 }
   0xd   :  { %p84_p6 = por %p83_p5, %p82_p4 }
   0xf   :  { %p85_p7 = pnand %p84_p6, %p78_p3 }
  0x11   :  { %88 = shalt.err (!%p85_p7)
}
  0x12   :  { %19 = dma.hbm_to_vmem [thread:$0]  %s194_s0, 128, %s17_s10, [#allocation3]  }
  0x13   :  { %s89_s25 = scalar_lea.hbm %s195_s1, 128 }
  0x14   :  { %p90_p8 = scmp.ne.s32.totalorder %s195_s1, %s89_s25  ;;  %p93_p9 = scmp.lt.u32.totalorder %s89_s25, %s195_s1 }
  0x16   :  { %p95_p10 = pnand %p93_p9, %p90_p8 }
  0x18   :  { %98 = shalt.err (!%p95_p10)
}
  0x19   :  { %s99_s30 = scalar_lea.vmem %s27_s12, 128  ;;  %p104_p12 = scmp.lt.s32.totalorder %s27_s12, %s27_s12 }
  0x1a   :  { %p100_p11 = scmp.ne.s32.totalorder %s27_s12, %s99_s30  ;;  %p105_p13 = scmp.lt.s32.totalorder %s99_s30, %s99_s30 }
  0x1c   :  { %p106_p0 = por %p105_p13, %p104_p12 }
  0x1e   :  { %p107_p1 = pnand %p106_p0, %p100_p11 }
  0x20   :  { %110 = shalt.err (!%p107_p1)
}
  0x21   :  { %29 = dma.hbm_to_vmem [thread:$0]  %s195_s1, 128, %s27_s12, [#allocation6]  }
  0x22   :  { %133 = dma.done.wait [#allocation3], 128  }
  0x23   :  { %134 = vsyncadd [#allocation3], 4294967168 }
  0x24   :  { %135 = dma.done.wait [#allocation6], 128  }
  0x25   :  { %136 = vsyncadd [#allocation6], 4294967168  ;;  %v36_v0 = vld [vmem:[#allocation5] sm:$0xff]  ;;  %s141_s4 = smov 32   ;;  %vm41_vm0 = vcmask 261120   ;;  %v43_v1 = vld [vmem:[#allocation2] sm:$0xff] }
  0x26   :  { %38 = vrot.lane.b32.xlu0 %v36_v0, %s141_s4  ;;  %s142_s5 = smov [#allocation7]   ;;  %vm45_vm1 = vcmask 523264  }
  0x27   :  { %s53_s6 = sshll.u32 %s142_s5, 4  ;;  %s54_s6 = int_to_ptr.vmem [resolvable:$true] %s53_s6 }
  0x28   :  { %s111_s7 = scalar_lea.vmem %s54_s6, 128  ;;  %p116_p3 = scmp.lt.s32.totalorder %s54_s6, %s54_s6 }
  0x29   :  { %p112_p2 = scmp.ne.s32.totalorder %s54_s6, %s111_s7  ;;  %p117_p4 = scmp.lt.s32.totalorder %s111_s7, %s111_s7 }
  0x2b   :  { %p118_p5 = por %p117_p4, %p116_p3 }
  0x2d   :  { %p119_p6 = pnand %p118_p5, %p112_p2 }
  0x98   :  { %v39_v2 = vpop.permute.xlu0 %38 }
  0x99   :  { %v42_v3 = vsel %vm41_vm0, %v36_v0, %v39_v2 }
  0x9a   :  { %v44_v4 = vadd.f32 %v43_v1, %v42_v3 }
  0x9c   :  { %46 = vst.msk [vmem:[#allocation7] sm:$0xff] %vm45_vm1, %v44_v4 }
  0x9d   :  { %122 = shalt.err (!%p119_p6)
}
  0x9e   :  { %s123_s9 = scalar_lea.hbm %s196_s2, 128 }
  0x9f   :  { %p124_p7 = scmp.ne.s32.totalorder %s196_s2, %s123_s9  ;;  %p127_p8 = scmp.lt.u32.totalorder %s123_s9, %s196_s2 }
  0xa1   :  { %p129_p9 = pnand %p127_p8, %p124_p7 }
  0xa3   :  { %132 = shalt.err (!%p129_p9)
}
  0xa4   :  { %56 = dma.vmem_to_hbm [thread:$0]  %s54_s6, 128, %s196_s2, [#allocation4]  }
  0xa5   :  { %137 = dma.done.wait [#allocation4], 128  }
  0xa6   :  { %138 = vsyncadd [#allocation4], 4294967168 }
  0xa7   :  { %60 = vsyncpa [#allocation3], 1 }
  0xa8   :  { %61 = vsyncpa [#allocation6], 1 }
  0xa9   :  { %62 = vsyncpa [#allocation4], 1 }

</bundles_post_ra>
